<compile_context>
chip_gen: v6e
topology: v6e:2x2x1
jax: 0.10.0
libtpu: 0.0.40
codegen_flags: <defaults>
</compile_context>

<pallas_src>
import functools

import jax
import jax.numpy as jnp
from jax.experimental import pallas as pl
from jax.experimental.pallas import tpu as pltpu

# ---- model dimensions (small, deterministic) ----
B, C, H, W = 2, 3, 16, 16          # input images (NCHW)
IN_DIM = C * H * W                 # 768
FEAT_DIM = 64                      # feature extractor output dim
NUM_CLASSES = 10                   # task classifier output dim
HID = 128                          # domain classifier hidden dim
HID2 = HID // 2                    # 64
NUM_DOMAINS = 2
BN_EPS = 1e-5

# ---- padded / fused kernel-side dimensions (all 128-lane aligned) ----
LANE = 128
FEAT_PAD = 128                     # feat padded 64 -> 128 (padded lanes are exactly 0)
HEAD_PAD = 2 * LANE                # fused head: [task (10, padded to 128) | dom-linear-1 (128)]
HID2_PAD = 128                     # domain block-2 output 64 -> 128
DOM_OFF = 16                       # lane offset of the domain logits inside the packed slab
# packing invariant: task occupies lanes [0, NUM_CLASSES), dom occupies
# lanes [DOM_OFF, DOM_OFF + NUM_DOMAINS); both fit disjointly in one 128-lane slab.
assert NUM_CLASSES <= DOM_OFF and DOM_OFF + NUM_DOMAINS <= LANE


def _round_up(v, m):
    return -(-v // m) * m


def dann_kernel(x_ref, wf_ref, wh_ref, w2_ref, w3_ref, bias_ref, out_ref, *,
                with_features):
    """Fused DANN forward on one (TB, IN_DIM) batch tile.

    Inputs (all VMEM; weights f32 or bf16, biases f32):
      x_ref    : (TB, IN_DIM)
      wf_ref   : (IN_DIM, FEAT_PAD)        feature Linear (zero-padded cols 64:128)
      wh_ref   : (FEAT_PAD, HEAD_PAD)      fused [task | BN-folded dom-linear-1]
      w2_ref   : (HID, HID2_PAD)           BN-folded dom-linear-2 (zero-padded cols)
      w3_ref   : (HID2_PAD, LANE)          dom-linear-3; logits pre-shifted to lanes 16:18
      bias_ref : (4, HEAD_PAD)             packed biases: rows = bf, b_head, b2', b3
    Output:
      out_ref  : (TB, 256) = [feat(128) | logits(128)]   (or (TB, 128) w/o features)
                 logits lanes 0:10 = task logits, lanes 16:18 = domain logits.
    """
    x = x_ref[...]
    w_dtype = wf_ref.dtype

    bf = bias_ref[0:1, 0:FEAT_PAD]
    bh = bias_ref[1:2, :]
    b2 = bias_ref[2:3, 0:HID2_PAD]
    b3 = bias_ref[3:4, 0:LANE]

    # ---- feature extractor (Flatten done in wrapper): Linear + ReLU ----
    feat = jnp.maximum(
        jnp.dot(x, wf_ref[...], preferred_element_type=jnp.float32) + bf, 0.0)

    # ---- fused head: task classifier (lanes 0:10 of cols 0:128) and BN-folded
    #      domain Linear-1 (cols 128:256) share the same LHS -> single MXU push ----
    head = jnp.dot(feat.astype(w_dtype), wh_ref[...],
                   preferred_element_type=jnp.float32) + bh
    task_slab = head[:, 0:LANE]                       # lanes 0:NUM_CLASSES = task logits
    # gradient reversal is identity in forward; Dropout is identity in eval mode.
    # TODO(synk): training-mode Dropout / BatchNorm not modeled (eval-mode forward only).
    h1 = jnp.maximum(head[:, LANE:2 * LANE], 0.0)     # (TB, HID)

    # ---- domain block 2: BN-folded Linear + ReLU (padded lanes stay exactly 0) ----
    h2 = jnp.maximum(
        jnp.dot(h1.astype(w_dtype), w2_ref[...],
                preferred_element_type=jnp.float32) + b2, 0.0)

    # ---- final domain logits, pre-shifted to lanes DOM_OFF:DOM_OFF+2 of a 128 slab ----
    dom_slab = jnp.dot(h2.astype(w_dtype), w3_ref[...],
                       preferred_element_type=jnp.float32) + b3

    # task_slab is non-zero only on lanes 0:10, dom_slab only on lanes 16:18
    # (zero-padded weight columns + zero bias lanes), so addition == concatenation.
    logits = task_slab + dom_slab

    # ---- single lane-dense output slab: 128-aligned segments -> unmasked stores ----
    col = 0
    if with_features:
        out_ref[:, 0:FEAT_PAD] = feat
        col = FEAT_PAD
    out_ref[:, col:col + LANE] = logits


def init_params(key):
    """Deterministic parameter init. Linear weights stored as (in, out) so the
    kernel computes x @ W, matching PyTorch's x @ W_pt.T."""
    ks = jax.random.split(key, 16)
    p = {}
    s = 0.05
    p["wf"] = jax.random.normal(ks[0], (IN_DIM, FEAT_DIM), jnp.float32) * s
    p["bf"] = jax.random.normal(ks[1], (1, FEAT_DIM), jnp.float32) * s
    p["wt"] = jax.random.normal(ks[2], (FEAT_DIM, NUM_CLASSES), jnp.float32) * s
    p["bt"] = jax.random.normal(ks[3], (1, NUM_CLASSES), jnp.float32) * s
    # domain classifier
    p["w1"] = jax.random.normal(ks[4], (FEAT_DIM, HID), jnp.float32) * s
    p["b1"] = jax.random.normal(ks[5], (1, HID), jnp.float32) * s
    p["g1"] = 1.0 + jax.random.normal(ks[6], (1, HID), jnp.float32) * 0.1
    p["be1"] = jax.random.normal(ks[7], (1, HID), jnp.float32) * 0.1
    p["m1"] = jax.random.normal(ks[8], (1, HID), jnp.float32) * 0.1
    p["v1"] = 1.0 + jnp.abs(jax.random.normal(ks[9], (1, HID), jnp.float32)) * 0.1
    p["w2"] = jax.random.normal(ks[10], (HID, HID2), jnp.float32) * s
    p["b2"] = jax.random.normal(ks[11], (1, HID2), jnp.float32) * s
    p["g2"] = 1.0 + jax.random.normal(ks[12], (1, HID2), jnp.float32) * 0.1
    p["be2"] = jax.random.normal(ks[13], (1, HID2), jnp.float32) * 0.1
    p["m2"] = jax.random.normal(ks[14], (1, HID2), jnp.float32) * 0.1
    p["v2"] = 1.0 + jnp.abs(jax.random.normal(ks[15], (1, HID2), jnp.float32)) * 0.1
    kw3, kb3 = jax.random.split(ks[0])
    p["w3"] = jax.random.normal(kw3, (HID2, NUM_DOMAINS), jnp.float32) * s
    p["b3"] = jax.random.normal(kb3, (1, NUM_DOMAINS), jnp.float32) * s
    return p


def fold_and_pack_params(p, w_dtype=jnp.float32):
    """Fold BatchNorm (running stats) into the Linears, fuse the task + domain-1
    weights into one head, zero-pad everything to 128-lane-aligned shapes, shift the
    final domain-logit columns to lanes DOM_OFF:DOM_OFF+NUM_DOMAINS (so the kernel can
    pack task+dom into one 128-lane slab with a plain add), and pack all bias vectors
    into a single (4, HEAD_PAD) array.  Weights are emitted in `w_dtype`."""
    # BN fold: y = g*(h - m)/sqrt(v+eps) + be  ==  h*(g/sqrt) + ((b - m)*(g/sqrt) + be)
    scale1 = p["g1"] / jnp.sqrt(p["v1"] + BN_EPS)                     # (1, HID)
    w1f = p["w1"] * scale1                                            # (FEAT_DIM, HID)
    b1f = (p["b1"] - p["m1"]) * scale1 + p["be1"]                     # (1, HID)
    scale2 = p["g2"] / jnp.sqrt(p["v2"] + BN_EPS)                     # (1, HID2)
    w2f = p["w2"] * scale2                                            # (HID, HID2)
    b2f = (p["b2"] - p["m2"]) * scale2 + p["be2"]                     # (1, HID2)

    # feature Linear padded to FEAT_PAD output columns (padded lanes -> 0 after ReLU)
    wf = jnp.zeros((IN_DIM, FEAT_PAD), jnp.float32).at[:, :FEAT_DIM].set(p["wf"])
    bf = jnp.zeros((1, FEAT_PAD), jnp.float32).at[:, :FEAT_DIM].set(p["bf"])

    # fused head: cols 0:NUM_CLASSES = task classifier, cols 128:256 = folded dom Linear-1
    # (cols NUM_CLASSES:128 are structurally zero -- ~60 KiB of zero weight traffic,
    #  loaded once per core; kept for the single-MXU-push head fusion.)
    wh = jnp.zeros((FEAT_PAD, HEAD_PAD), jnp.float32)
    wh = wh.at[:FEAT_DIM, :NUM_CLASSES].set(p["wt"])
    wh = wh.at[:FEAT_DIM, LANE:LANE + HID].set(w1f)
    bh = jnp.zeros((1, HEAD_PAD), jnp.float32)
    bh = bh.at[:, :NUM_CLASSES].set(p["bt"])
    bh = bh.at[:, LANE:LANE + HID].set(b1f)

    # domain block 2 (folded), output padded 64 -> 128 (padded lanes stay 0 after ReLU)
    w2p = jnp.zeros((HID, HID2_PAD), jnp.float32).at[:, :HID2].set(w2f)
    b2p = jnp.zeros((1, HID2_PAD), jnp.float32).at[:, :HID2].set(b2f)

    # final domain Linear: K padded 64 -> 128 (zero rows); output columns pre-shifted
    # to lanes DOM_OFF:DOM_OFF+NUM_DOMAINS of a 128-lane slab so the kernel packs
    # task+dom logits into a single slab with one add (halves output writeback bytes).
    w3p = jnp.zeros((HID2_PAD, LANE), jnp.float32)
    w3p = w3p.at[:HID2, DOM_OFF:DOM_OFF + NUM_DOMAINS].set(p["w3"])
    b3p = jnp.zeros((1, LANE), jnp.float32)
    b3p = b3p.at[:, DOM_OFF:DOM_OFF + NUM_DOMAINS].set(p["b3"])

    # pack all bias vectors into one array (one input ref instead of five); biases stay f32
    bias = jnp.zeros((4, HEAD_PAD), jnp.float32)
    bias = bias.at[0, :FEAT_PAD].set(bf[0])
    bias = bias.at[1, :].set(bh[0])
    bias = bias.at[2, :HID2_PAD].set(b2p[0])
    bias = bias.at[3, :LANE].set(b3p[0])

    wf = wf.astype(w_dtype)
    wh = wh.astype(w_dtype)
    w2p = w2p.astype(w_dtype)
    w3p = w3p.astype(w_dtype)
    return wf, wh, w2p, w3p, bias


def dann_forward(x, params, alpha=1.0, lambda_factor=1.0, return_features=False,
                 block_b=512, use_bf16=False):
    """DANN.forward. alpha * lambda_factor only scales reversed gradients in the
    backward pass; forward output does not depend on them.

    use_bf16=True streams x and weights as bf16 (f32 MXU accumulation): ~2x fewer
    HBM bytes and no multi-pass f32 MXU path, at reduced precision (> 1e-4)."""
    del alpha, lambda_factor  # identity in forward
    b = x.shape[0]
    w_dtype = jnp.bfloat16 if use_bf16 else jnp.float32
    x_flat = x.reshape(b, -1).astype(w_dtype)   # Flatten (part of feature extractor)

    wf, wh, w2p, w3p, bias = fold_and_pack_params(params, w_dtype)

    # ---- batch tiling (generation-aware, VMEM-safe) ----
    b8 = max(8, _round_up(b, 8))
    tb = min(block_b, b8)
    # Cap tb so double-buffered (x tile + out tile) + ~0.65 MiB of weights stays well
    # under every generation's default scoped-VMEM limit (v5e 16 MiB, v6e/v7x 32 MiB)
    # without needing vmem_limit_bytes.  tb=1024 f32 ~= 9-10 MiB total.
    tb = min(tb, 1024)
    # v7x has 2 TensorCores: when the whole batch would otherwise be one tile, split it
    # so dimension_semantics=("parallel",) can shard across both cores.
    if tb == b8 and b8 >= 256:
        tb = _round_up(b8 // 2, 8)
    tb = _round_up(tb, 8)
    b_pad = _round_up(b8, tb)
    if b_pad != b:
        x_flat = jnp.pad(x_flat, ((0, b_pad - b), (0, 0)))

    out_w = (FEAT_PAD if return_features else 0) + LANE
    grid = (b_pad // tb,)

    def full_block(shape):
        # constant-index (always block (0,0)) -> weights stay VMEM-resident per core.
        return pl.BlockSpec(shape, lambda i: (0, 0))

    out = pl.pallas_call(
        functools.partial(dann_kernel, with_features=return_features),
        out_shape=jax.ShapeDtypeStruct((b_pad, out_w), jnp.float32),
        grid=grid,
        in_specs=[
            pl.BlockSpec((tb, IN_DIM), lambda i: (i, 0)),   # batch-tiled input
            full_block((IN_DIM, FEAT_PAD)),
            full_block((FEAT_PAD, HEAD_PAD)),
            full_block((HID, HID2_PAD)),
            full_block((HID2_PAD, LANE)),
            full_block((4, HEAD_PAD)),
        ],
        out_specs=pl.BlockSpec((tb, out_w), lambda i: (i, 0)),
        compiler_params=pltpu.CompilerParams(dimension_semantics=("parallel",)),
    )(x_flat, wf, wh, w2p, w3p, bias)

    out = out[:b]
    col = 0
    if return_features:
        features = out[:, 0:FEAT_DIM]
        col = FEAT_PAD
    task_logits = out[:, col:col + NUM_CLASSES]
    domain_logits = out[:, col + DOM_OFF:col + DOM_OFF + NUM_DOMAINS]

    if return_features:
        return task_logits, domain_logits, features
    return task_logits, domain_logits


def dann_forward_ref(x, params):
    """Pure-JAX reference of the same forward pass (for correctness check)."""
    b = x.shape[0]
    xf = x.reshape(b, -1).astype(jnp.float32)
    feat = jnp.maximum(xf @ params["wf"] + params["bf"], 0.0)
    task = feat @ params["wt"] + params["bt"]
    h = feat @ params["w1"] + params["b1"]
    h = params["g1"] * (h - params["m1"]) / jnp.sqrt(params["v1"] + BN_EPS) + params["be1"]
    h = jnp.maximum(h, 0.0)
    h = h @ params["w2"] + params["b2"]
    h = params["g2"] * (h - params["m2"]) / jnp.sqrt(params["v2"] + BN_EPS) + params["be2"]
    h = jnp.maximum(h, 0.0)
    dom = h @ params["w3"] + params["b3"]
    return task, dom, feat


if __name__ == "__main__":
    key = jax.random.PRNGKey(0)
    kx, kp = jax.random.split(key)
    x = jax.random.normal(kx, (B, C, H, W), jnp.float32)   # NCHW, like PyTorch
    params = init_params(kp)

    task_logits, domain_logits, features = dann_forward(x, params, return_features=True)
    jax.block_until_ready((task_logits, domain_logits, features))

    # sanity check against pure-JAX reference (f32 path)
    task_r, dom_r, feat_r = dann_forward_ref(x, params)
    assert task_logits.shape == (B, NUM_CLASSES)
    assert domain_logits.shape == (B, NUM_DOMAINS)
    assert features.shape == (B, FEAT_DIM)
    assert jnp.allclose(task_logits, task_r, atol=1e-4, rtol=1e-4)
    assert jnp.allclose(domain_logits, dom_r, atol=1e-4, rtol=1e-4)
    assert jnp.allclose(features, feat_r, atol=1e-4, rtol=1e-4)

    # lighter inference path (no feature writeback, single 128-lane output slab)
    t2, d2 = dann_forward(x, params, return_features=False)
    jax.block_until_ready((t2, d2))
    assert jnp.allclose(t2, task_r, atol=1e-4, rtol=1e-4)
    assert jnp.allclose(d2, dom_r, atol=1e-4, rtol=1e-4)

    # optional bf16 operand path (halved weight/activation streaming), looser tolerance
    t3, d3 = dann_forward(x, params, return_features=False, use_bf16=True)
    jax.block_until_ready((t3, d3))
    assert jnp.allclose(t3, task_r, atol=3e-2, rtol=3e-2)
    assert jnp.allclose(d3, dom_r, atol=3e-2, rtol=3e-2)

    print("KERNEL_OK")
</pallas_src>

<mosaic_0001>
module attributes {stable_mosaic.version = 11 : i64} {
  func.func @dann_kernel(%arg0: i32, %arg1: memref<8x768xf32, #tpu.memory_space<vmem>>, %arg2: memref<768x128xf32, #tpu.memory_space<vmem>>, %arg3: memref<128x256xf32, #tpu.memory_space<vmem>>, %arg4: memref<128x128xf32, #tpu.memory_space<vmem>>, %arg5: memref<128x128xf32, #tpu.memory_space<vmem>>, %arg6: memref<4x256xf32, #tpu.memory_space<vmem>>, %arg7: memref<8x256xf32, #tpu.memory_space<vmem>>) attributes {dimension_semantics = [#tpu.dimension_semantics<parallel>], iteration_bounds = array<i64: 1>, scalar_prefetch = 0 : i64, scratch_operands = 0 : i64, tpu.core_type = #tpu.core_type<tc>, window_params = [{transform_indices = @transform_0, window_bounds = array<i64: 8, 768>}, {pipeline_mode = #tpu.pipeline_mode<synchronous>, transform_indices = @transform_1, window_bounds = array<i64: 768, 128>}, {pipeline_mode = #tpu.pipeline_mode<synchronous>, transform_indices = @transform_2, window_bounds = array<i64: 128, 256>}, {pipeline_mode = #tpu.pipeline_mode<synchronous>, transform_indices = @transform_3, window_bounds = array<i64: 128, 128>}, {pipeline_mode = #tpu.pipeline_mode<synchronous>, transform_indices = @transform_4, window_bounds = array<i64: 128, 128>}, {pipeline_mode = #tpu.pipeline_mode<synchronous>, transform_indices = @transform_5, window_bounds = array<i64: 4, 256>}, {transform_indices = @transform_6, window_bounds = array<i64: 8, 256>}]} {
    %c0 = arith.constant 0 : index
    %c0_0 = arith.constant 0 : index
    %0 = vector.load %arg1[%c0, %c0_0] : memref<8x768xf32, #tpu.memory_space<vmem>>, vector<8x768xf32>
    %c0_1 = arith.constant 0 : index
    %c0_2 = arith.constant 0 : index
    %1 = vector.load %arg6[%c0_1, %c0_2] : memref<4x256xf32, #tpu.memory_space<vmem>>, vector<1x128xf32>
    %c1 = arith.constant 1 : index
    %c0_3 = arith.constant 0 : index
    %2 = vector.load %arg6[%c1, %c0_3] : memref<4x256xf32, #tpu.memory_space<vmem>>, vector<1x256xf32>
    %c2 = arith.constant 2 : index
    %c0_4 = arith.constant 0 : index
    %3 = vector.load %arg6[%c2, %c0_4] : memref<4x256xf32, #tpu.memory_space<vmem>>, vector<1x128xf32>
    %c3 = arith.constant 3 : index
    %c0_5 = arith.constant 0 : index
    %4 = vector.load %arg6[%c3, %c0_5] : memref<4x256xf32, #tpu.memory_space<vmem>>, vector<1x128xf32>
    %c0_6 = arith.constant 0 : index
    %c0_7 = arith.constant 0 : index
    %5 = vector.load %arg2[%c0_6, %c0_7] : memref<768x128xf32, #tpu.memory_space<vmem>>, vector<768x128xf32>
    %cst = arith.constant dense<0.000000e+00> : vector<8x128xf32>
    %6 = tpu.matmul %0, %5, %cst {dimension_numbers = #tpu.dot_dimension_numbers<[1], [0], [0], [1], [0, 0, 1, 1], [], []>} : vector<8x768xf32>, vector<768x128xf32>, vector<8x128xf32> -> vector<8x128xf32>
    %7 = vector.broadcast %1 : vector<1x128xf32> to vector<8x128xf32>
    %8 = arith.addf %6, %7 : vector<8x128xf32>
    %cst_8 = arith.constant 0.000000e+00 : f32
    %9 = vector.broadcast %cst_8 : f32 to vector<8x128xf32>
    %10 = arith.maximumf %8, %9 : vector<8x128xf32>
    %c0_9 = arith.constant 0 : index
    %c0_10 = arith.constant 0 : index
    %11 = vector.load %arg3[%c0_9, %c0_10] : memref<128x256xf32, #tpu.memory_space<vmem>>, vector<128x256xf32>
    %cst_11 = arith.constant dense<0.000000e+00> : vector<8x256xf32>
    %12 = tpu.matmul %10, %11, %cst_11 {dimension_numbers = #tpu.dot_dimension_numbers<[1], [0], [0], [1], [0, 0, 1, 1], [], []>} : vector<8x128xf32>, vector<128x256xf32>, vector<8x256xf32> -> vector<8x256xf32>
    %13 = vector.broadcast %2 : vector<1x256xf32> to vector<8x256xf32>
    %14 = arith.addf %12, %13 : vector<8x256xf32>
    %15 = vector.extract_strided_slice %14 {offsets = [0, 0], sizes = [8, 128], strides = [1, 1]} : vector<8x256xf32> to vector<8x128xf32>
    %16 = vector.extract_strided_slice %14 {offsets = [0, 128], sizes = [8, 128], strides = [1, 1]} : vector<8x256xf32> to vector<8x128xf32>
    %cst_12 = arith.constant 0.000000e+00 : f32
    %17 = vector.broadcast %cst_12 : f32 to vector<8x128xf32>
    %18 = arith.maximumf %16, %17 : vector<8x128xf32>
    %c0_13 = arith.constant 0 : index
    %c0_14 = arith.constant 0 : index
    %19 = vector.load %arg4[%c0_13, %c0_14] : memref<128x128xf32, #tpu.memory_space<vmem>>, vector<128x128xf32>
    %cst_15 = arith.constant dense<0.000000e+00> : vector<8x128xf32>
    %20 = tpu.matmul %18, %19, %cst_15 {dimension_numbers = #tpu.dot_dimension_numbers<[1], [0], [0], [1], [0, 0, 1, 1], [], []>} : vector<8x128xf32>, vector<128x128xf32>, vector<8x128xf32> -> vector<8x128xf32>
    %21 = vector.broadcast %3 : vector<1x128xf32> to vector<8x128xf32>
    %22 = arith.addf %20, %21 : vector<8x128xf32>
    %cst_16 = arith.constant 0.000000e+00 : f32
    %23 = vector.broadcast %cst_16 : f32 to vector<8x128xf32>
    %24 = arith.maximumf %22, %23 : vector<8x128xf32>
    %c0_17 = arith.constant 0 : index
    %c0_18 = arith.constant 0 : index
    %25 = vector.load %arg5[%c0_17, %c0_18] : memref<128x128xf32, #tpu.memory_space<vmem>>, vector<128x128xf32>
    %cst_19 = arith.constant dense<0.000000e+00> : vector<8x128xf32>
    %26 = tpu.matmul %24, %25, %cst_19 {dimension_numbers = #tpu.dot_dimension_numbers<[1], [0], [0], [1], [0, 0, 1, 1], [], []>} : vector<8x128xf32>, vector<128x128xf32>, vector<8x128xf32> -> vector<8x128xf32>
    %27 = vector.broadcast %4 : vector<1x128xf32> to vector<8x128xf32>
    %28 = arith.addf %26, %27 : vector<8x128xf32>
    %29 = arith.addf %15, %28 : vector<8x128xf32>
    %c0_20 = arith.constant 0 : index
    %c0_21 = arith.constant 0 : index
    %30 = vector.load %arg7[%c0_20, %c0_21] : memref<8x256xf32, #tpu.memory_space<vmem>>, vector<8x128xf32>
    tpu.vector_store %arg7[%c0_20, %c0_21], %10 {strides = array<i32>} : memref<8x256xf32, #tpu.memory_space<vmem>>, vector<8x128xf32>,
    %c0_22 = arith.constant 0 : index
    %c128 = arith.constant 128 : index
    %31 = vector.load %arg7[%c0_22, %c128] : memref<8x256xf32, #tpu.memory_space<vmem>>, vector<8x128xf32>
    tpu.vector_store %arg7[%c0_22, %c128], %29 {strides = array<i32>} : memref<8x256xf32, #tpu.memory_space<vmem>>, vector<8x128xf32>,
    return
  }
  func.func @transform_0(%arg0: i32) -> (i32, i32) {
    %c0_i32 = arith.constant 0 : i32
    %c0_i32_0 = arith.constant 0 : i32
    return %arg0, %c0_i32 : i32, i32
  }
  func.func @transform_1(%arg0: i32) -> (i32, i32) {
    %c0_i32 = arith.constant 0 : i32
    %c0_i32_0 = arith.constant 0 : i32
    %c0_i32_1 = arith.constant 0 : i32
    return %c0_i32, %c0_i32_0 : i32, i32
  }
  func.func @transform_2(%arg0: i32) -> (i32, i32) {
    %c0_i32 = arith.constant 0 : i32
    %c0_i32_0 = arith.constant 0 : i32
    %c0_i32_1 = arith.constant 0 : i32
    return %c0_i32, %c0_i32_0 : i32, i32
  }
  func.func @transform_3(%arg0: i32) -> (i32, i32) {
    %c0_i32 = arith.constant 0 : i32
    %c0_i32_0 = arith.constant 0 : i32
    %c0_i32_1 = arith.constant 0 : i32
    return %c0_i32, %c0_i32_0 : i32, i32
  }
  func.func @transform_4(%arg0: i32) -> (i32, i32) {
    %c0_i32 = arith.constant 0 : i32
    %c0_i32_0 = arith.constant 0 : i32
    %c0_i32_1 = arith.constant 0 : i32
    return %c0_i32, %c0_i32_0 : i32, i32
  }
  func.func @transform_5(%arg0: i32) -> (i32, i32) {
    %c0_i32 = arith.constant 0 : i32
    %c0_i32_0 = arith.constant 0 : i32
    %c0_i32_1 = arith.constant 0 : i32
    return %c0_i32, %c0_i32_0 : i32, i32
  }
  func.func @transform_6(%arg0: i32) -> (i32, i32) {
    %c0_i32 = arith.constant 0 : i32
    %c0_i32_0 = arith.constant 0 : i32
    return %arg0, %c0_i32 : i32, i32
  }
}

</mosaic_0001>

<bundles_post_ra>
// kernel: tpu_custom_call.1
= control target key start
LH: loop header
LB: loop body
LE: loop exit
PB: predicated region body
PF: predicated region fallthrough
CT: control target
= control target key end

     0   :  { %11 = vsyncpa [#allocation3], 0  ;;  %s1202_s0 = inlined_call_operand.hbm [shape: f32[8,768], index: 0, kind: input, shape index: {}]   ;;  %s1203_s1 = inlined_call_operand.hbm [shape: f32[768,128], index: 1, kind: input, shape index: {}]   ;;  %s1204_s2 = inlined_call_operand.hbm [shape: f32[128,256], index: 2, kind: input, shape index: {}]   ;;  %s1205_s3 = inlined_call_operand.hbm [shape: f32[128,128], index: 3, kind: input, shape index: {}]   ;;  %s1206_s4 = inlined_call_operand.hbm [shape: f32[128,128], index: 4, kind: input, shape index: {}]   ;;  %s1207_s5 = inlined_call_operand.vmem [shape: f32[4,256], index: 5, kind: input, shape index: {}]   ;;  %s1208_s6 = inlined_call_operand.hbm [shape: f32[8,256], index: 6, kind: output, shape index: {}]  }
   0x1   :  { %12 = vsyncpa [#allocation6], 0 }
   0x2   :  { %13 = vsyncpa [#allocation9], 0 }
   0x3   :  { %14 = vsyncpa [#allocation4], 0  ;;  %s1081_s21 = smov [#allocation5]  }
   0x4   :  { %s30_s22 = sshll.u32 %s1081_s21, 4  ;;  %s31_s22 = int_to_ptr.vmem [resolvable:$true] %s30_s22 }
   0x5   :  { %s961_s23 = scalar_lea.vmem %s31_s22, 12288  ;;  %p966_p1 = scmp.lt.s32.totalorder %s31_s22, %s31_s22 }
   0x6   :  { %p962_p0 = scmp.ne.s32.totalorder %s31_s22, %s961_s23  ;;  %p967_p2 = scmp.lt.s32.totalorder %s961_s23, %s961_s23 }
   0x8   :  { %p968_p3 = por %p967_p2, %p966_p1 }
   0xa   :  { %p969_p4 = pnand %p968_p3, %p962_p0 }
   0xc   :  { %972 = shalt.err (!%p969_p4)
}
   0xd   :  { %s1082_s24 = smov 128   ;;  %s1083_s25 = smov 8  }
   0xe   :  { %36 = dma.hbm_to_vmem [thread:$0]  %s1203_s1, 12288, %s31_s22, [#allocation6], %s1082_s24, %s1082_s24, %s1083_s25  }
   0xf   :  { %s1084_s28 = smov [#allocation8]   ;;  %s1085_s30 = smov [#allocation2]  }
  0x10   :  { %s54_s29 = sshll.u32 %s1084_s28, 4  ;;  %s21_s7 = sshll.u32 %s1085_s30, 4  ;;  %s55_s29 = int_to_ptr.vmem [resolvable:$true] %s54_s29  ;;  %s22_s7 = int_to_ptr.vmem [resolvable:$true] %s21_s7 }
  0x11   :  { %s981_s8 = scalar_lea.vmem %s55_s29, 2048  ;;  %p986_p6 = scmp.lt.s32.totalorder %s55_s29, %s55_s29 }
  0x12   :  { %p982_p5 = scmp.ne.s32.totalorder %s55_s29, %s981_s8  ;;  %p987_p7 = scmp.lt.s32.totalorder %s981_s8, %s981_s8 }
  0x14   :  { %p988_p8 = por %p987_p7, %p986_p6 }
  0x16   :  { %p989_p9 = pnand %p988_p8, %p982_p5 }
  0x18   :  { %992 = shalt.err (!%p989_p9)
}
  0x19   :  { %60 = dma.hbm_to_vmem [thread:$0]  %s1205_s3, 2048, %s55_s29, [#allocation9], %s1082_s24, %s1082_s24, %s1083_s25  }
  0x1a   :  { %s1001_s1 = scalar_lea.vmem %s22_s7, 768  ;;  %p1006_p11 = scmp.lt.s32.totalorder %s22_s7, %s22_s7 }
  0x1b   :  { %p1002_p10 = scmp.ne.s32.totalorder %s22_s7, %s1001_s1  ;;  %p1007_p12 = scmp.lt.s32.totalorder %s1001_s1, %s1001_s1 }
  0x1d   :  { %p1008_p13 = por %p1007_p12, %p1006_p11 }
  0x1f   :  { %p1009_p0 = pnand %p1008_p13, %p1002_p10 }
  0x21   :  { %1012 = shalt.err (!%p1009_p0)
}
  0x22   :  { %24 = dma.hbm_to_vmem [thread:$0]  %s1202_s0, 768, %s22_s7, [#allocation3]  }
  0x23   :  { %s1086_s13 = smov [#allocation7]  }
  0x24   :  { %s42_s14 = sshll.u32 %s1086_s13, 4  ;;  %s43_s14 = int_to_ptr.vmem [resolvable:$true] %s42_s14 }
  0x25   :  { %s1021_s15 = scalar_lea.vmem %s43_s14, 4096  ;;  %p1026_p2 = scmp.lt.s32.totalorder %s43_s14, %s43_s14 }
  0x26   :  { %p1022_p1 = scmp.ne.s32.totalorder %s43_s14, %s1021_s15  ;;  %p1027_p3 = scmp.lt.s32.totalorder %s1021_s15, %s1021_s15 }
  0x28   :  { %p1028_p4 = por %p1027_p3, %p1026_p2 }
  0x2a   :  { %p1029_p5 = pnand %p1028_p4, %p1022_p1 }
  0x2c   :  { %1032 = shalt.err (!%p1029_p5)
}
  0x2d   :  { %s1087_s3 = smov 256   ;;  %s1088_s16 = smov 16  }
  0x2e   :  { %48 = dma.hbm_to_vmem [thread:$0]  %s1204_s2, 4096, %s43_s14, [#allocation6], %s1087_s3, %s1087_s3, %s1088_s16  }
  0x2f   :  { %s1089_s19 = smov [#allocation10]  }
  0x30   :  { %s66_s20 = sshll.u32 %s1089_s19, 4  ;;  %s67_s20 = int_to_ptr.vmem [resolvable:$true] %s66_s20 }
  0x31   :  { %s1041_s0 = scalar_lea.vmem %s67_s20, 2048  ;;  %p1046_p7 = scmp.lt.s32.totalorder %s67_s20, %s67_s20 }
  0x32   :  { %p1042_p6 = scmp.ne.s32.totalorder %s67_s20, %s1041_s0  ;;  %p1047_p8 = scmp.lt.s32.totalorder %s1041_s0, %s1041_s0 }
  0x34   :  { %p1048_p9 = por %p1047_p8, %p1046_p7 }
  0x36   :  { %p1049_p10 = pnand %p1048_p9, %p1042_p6 }
  0x38   :  { %1052 = shalt.err (!%p1049_p10)
}
  0x39   :  { %72 = dma.hbm_to_vmem [thread:$0]  %s1206_s4, 2048, %s67_s20, [#allocation9], %s1082_s24, %s1082_s24, %s1083_s25  }
  0x3a   :  { %1073 = dma.done.wait [#allocation3], 768  }
  0x3b   :  { %1074 = vsyncadd [#allocation3], 4294966528 }
  0x3c   :  { %1075 = dma.done.wait [#allocation6], 16384  }
  0x3d   :  { %1076 = vsyncadd [#allocation6], 4294950912 }
  0x3e   :  { %1077 = dma.done.wait [#allocation9], 4096  }
  0x3f   :  { %1078 = vsyncadd [#allocation9], 4294963200  ;;  %v132_v0 = vld [vmem:[#allocation5 + $0xf8] sm:$0xff]  ;;  %v131_v2 = vld [vmem:[#allocation5 + $0xf0] sm:$0xff]  ;;  %vm1091_vm0 = vmmov 0   ;;  %s1092_s29 = smov [#allocation11]  }
  0x40   :  { %v116_v1 = vld [vmem:[#allocation5 + $0x78] sm:$0xff]  ;;  %732 = vmatprep.subr.mxu0 %v132_v0  ;;  %v115_v4 = vld [vmem:[#allocation5 + $0x70] sm:$0xff]  ;;  %v130_v6 = vld [vmem:[#allocation5 + $0xe8] sm:$0xff]  ;;  %s717_s30 = sshll.u32 %s1092_s29, 4  ;;  %s718_s30 = int_to_ptr.vmem [resolvable:$true] %s717_s30 }
  0x41   :  { %v164_v3 = vld [vmem:[#allocation5 + $0x1f8] sm:$0xff]  ;;  %733 = vmatpush3.msra.mxu0 %v116_v1  ;;  %v163_v7 = vld [vmem:[#allocation5 + $0x1f0] sm:$0xff]  ;;  %v114_v8 = vld [vmem:[#allocation5 + $0x68] sm:$0xff]  ;;  %s1053_s7 = scalar_lea.vmem %s718_s30, 256  ;;  %p1058_p12 = scmp.lt.s32.totalorder %s718_s30, %s718_s30 }
  0x42   :  { %v148_v5 = vld [vmem:[#allocation5 + $0x178] sm:$0xff]  ;;  %767 = vmatprep.subr.mxu1 %v164_v3  ;;  %734 = vmatprep.subr.mxu0 %v131_v2  ;;  %v147_v9 = vld [vmem:[#allocation5 + $0x170] sm:$0xff]  ;;  %v162_v10 = vld [vmem:[#allocation5 + $0x1e8] sm:$0xff]  ;;  %p1054_p11 = scmp.ne.s32.totalorder %s718_s30, %s1053_s7  ;;  %p1059_p13 = scmp.lt.s32.totalorder %s1053_s7, %s1053_s7 }
  0x43   :  { %768 = vmatpush3.msra.mxu1 %v148_v5  ;;  %735 = vmatpush3.msra.mxu0 %v115_v4  ;;  %v129_v11 = vld [vmem:[#allocation5 + $0xe0] sm:$0xff]  ;;  %v146_v12 = vld [vmem:[#allocation5 + $0x168] sm:$0xff]  ;;  %v128_v15 = vld [vmem:[#allocation5 + $0xd8] sm:$0xff] }
  0x44   :  { %769 = vmatprep.subr.mxu1 %v163_v7  ;;  %736 = vmatprep.subr.mxu0 %v130_v6  ;;  %v113_v13 = vld [vmem:[#allocation5 + $0x60] sm:$0xff]  ;;  %v112_v17 = vld [vmem:[#allocation5 + $0x58] sm:$0xff]  ;;  %v127_v19 = vld [vmem:[#allocation5 + $0xd0] sm:$0xff]  ;;  %p1060_p0 = por %p1059_p13, %p1058_p12 }
  0x45   :  { %770 = vmatpush3.msra.mxu1 %v147_v9  ;;  %v161_v14 = vld [vmem:[#allocation5 + $0x1e0] sm:$0xff]  ;;  %737 = vmatpush3.msra.mxu0 %v114_v8  ;;  %v160_v18 = vld [vmem:[#allocation5 + $0x1d8] sm:$0xff]  ;;  %v111_v21 = vld [vmem:[#allocation5 + $0x50] sm:$0xff] }
  0x46   :  { %771 = vmatprep.subr.mxu1 %v162_v10  ;;  %v145_v16 = vld [vmem:[#allocation5 + $0x160] sm:$0xff]  ;;  %738 = vmatprep.subr.mxu0 %v129_v11  ;;  %v144_v20 = vld [vmem:[#allocation5 + $0x158] sm:$0xff]  ;;  %v159_v22 = vld [vmem:[#allocation5 + $0x1d0] sm:$0xff]  ;;  %p1061_p1 = pnand %p1060_p0, %p1054_p11 }
  0x47   :  { %772 = vmatpush3.msra.mxu1 %v146_v12  ;;  %739 = vmatpush3.msra.mxu0 %v113_v13  ;;  %v126_v23 = vld [vmem:[#allocation5 + $0xc8] sm:$0xff]  ;;  %v143_v24 = vld [vmem:[#allocation5 + $0x150] sm:$0xff]  ;;  %v125_v27 = vld [vmem:[#allocation5 + $0xc0] sm:$0xff] }
  0x48   :  { %773 = vmatprep.subr.mxu1 %v161_v14  ;;  %740 = vmatprep.subr.mxu0 %v128_v15  ;;  %v110_v25 = vld [vmem:[#allocation5 + $0x48] sm:$0xff]  ;;  %v109_v29 = vld [vmem:[#allocation5 + $0x40] sm:$0xff]  ;;  %v124_v31 = vld [vmem:[#allocation5 + $0xb8] sm:$0xff] }
  0x49   :  { %774 = vmatpush3.msra.mxu1 %v145_v16  ;;  %741 = vmatpush3.msra.mxu0 %v112_v17  ;;  %v158_v26 = vld [vmem:[#allocation5 + $0x1c8] sm:$0xff]  ;;  %v157_v30 = vld [vmem:[#allocation5 + $0x1c0] sm:$0xff]  ;;  %v108_v33 = vld [vmem:[#allocation5 + $0x38] sm:$0xff] }
  0x4a   :  { %775 = vmatprep.subr.mxu1 %v160_v18  ;;  %742 = vmatprep.subr.mxu0 %v127_v19  ;;  %v142_v28 = vld [vmem:[#allocation5 + $0x148] sm:$0xff]  ;;  %v141_v32 = vld [vmem:[#allocation5 + $0x140] sm:$0xff]  ;;  %v156_v34 = vld [vmem:[#allocation5 + $0x1b8] sm:$0xff] }
  0x4b   :  { %776 = vmatpush3.msra.mxu1 %v144_v20  ;;  %743 = vmatpush3.msra.mxu0 %v111_v21  ;;  %v123_v35 = vld [vmem:[#allocation5 + $0xb0] sm:$0xff]  ;;  %v140_v36 = vld [vmem:[#allocation5 + $0x138] sm:$0xff]  ;;  %v122_v39 = vld [vmem:[#allocation5 + $0xa8] sm:$0xff] }
  0x4c   :  { %777 = vmatprep.subr.mxu1 %v159_v22  ;;  %744 = vmatprep.subr.mxu0 %v126_v23  ;;  %v107_v37 = vld [vmem:[#allocation5 + $0x30] sm:$0xff]  ;;  %v106_v41 = vld [vmem:[#allocation5 + $0x28] sm:$0xff]  ;;  %v121_v43 = vld [vmem:[#allocation5 + $0xa0] sm:$0xff] }
  0x4d   :  { %778 = vmatpush3.msra.mxu1 %v143_v24  ;;  %745 = vmatpush3.msra.mxu0 %v110_v25  ;;  %v155_v38 = vld [vmem:[#allocation5 + $0x1b0] sm:$0xff]  ;;  %v154_v42 = vld [vmem:[#allocation5 + $0x1a8] sm:$0xff]  ;;  %v105_v45 = vld [vmem:[#allocation5 + $0x20] sm:$0xff] }
  0x4e   :  { %779 = vmatprep.subr.mxu1 %v158_v26  ;;  %746 = vmatprep.subr.mxu0 %v125_v27  ;;  %v139_v40 = vld [vmem:[#allocation5 + $0x130] sm:$0xff]  ;;  %v138_v44 = vld [vmem:[#allocation5 + $0x128] sm:$0xff]  ;;  %v153_v46 = vld [vmem:[#allocation5 + $0x1a0] sm:$0xff] }
  0x4f   :  { %780 = vmatpush3.msra.mxu1 %v142_v28  ;;  %747 = vmatpush3.msra.mxu0 %v109_v29  ;;  %v120_v47 = vld [vmem:[#allocation5 + $0x98] sm:$0xff]  ;;  %v137_v48 = vld [vmem:[#allocation5 + $0x120] sm:$0xff]  ;;  %v119_v51 = vld [vmem:[#allocation5 + $0x90] sm:$0xff] }
  0x50   :  { %781 = vmatprep.subr.mxu1 %v157_v30  ;;  %748 = vmatprep.subr.mxu0 %v124_v31  ;;  %v104_v49 = vld [vmem:[#allocation5 + $0x18] sm:$0xff]  ;;  %v103_v53 = vld [vmem:[#allocation5 + $0x10] sm:$0xff]  ;;  %v118_v55 = vld [vmem:[#allocation5 + $0x88] sm:$0xff] }
  0x51   :  { %782 = vmatpush3.msra.mxu1 %v141_v32  ;;  %749 = vmatpush3.msra.mxu0 %v108_v33  ;;  %v152_v50 = vld [vmem:[#allocation5 + $0x198] sm:$0xff]  ;;  %v151_v54 = vld [vmem:[#allocation5 + $0x190] sm:$0xff]  ;;  %v102_v57 = vld [vmem:[#allocation5 + $0x8] sm:$0xff] }
  0x52   :  { %783 = vmatprep.subr.mxu1 %v156_v34  ;;  %750 = vmatprep.subr.mxu0 %v123_v35  ;;  %v136_v52 = vld [vmem:[#allocation5 + $0x118] sm:$0xff]  ;;  %v135_v56 = vld [vmem:[#allocation5 + $0x110] sm:$0xff]  ;;  %v150_v58 = vld [vmem:[#allocation5 + $0x188] sm:$0xff] }
  0x53   :  { %784 = vmatpush3.msra.mxu1 %v140_v36  ;;  %751 = vmatpush3.msra.mxu0 %v107_v37  ;;  %v117_v59 = vld [vmem:[#allocation5 + $0x80] sm:$0xff]  ;;  %v91_v60 = vld [vmem:[#allocation2 + $0x8] sm:$0xff]  ;;  %v134_v62 = vld [vmem:[#allocation5 + $0x108] sm:$0xff] }
  0x54   :  { %785 = vmatprep.subr.mxu1 %v155_v38  ;;  %752 = vmatprep.subr.mxu0 %v122_v39  ;;  %v101_v61 = vld [vmem:[#allocation5] sm:$0xff]  ;;  %v90_v63 = vld [vmem:[#allocation2] sm:$0xff]  ;;  %v196_v1 = vld [vmem:[#allocation5 + $0x2f8] sm:$0xff] }
  0x55   :  { %786 = vmatpush3.msra.mxu1 %v139_v40  ;;  %753 = vmatpush3.msra.mxu0 %v106_v41  ;;  %v149_v0 = vld [vmem:[#allocation5 + $0x180] sm:$0xff]  ;;  %v93_v3 = vld [vmem:[#allocation2 + $0x18] sm:$0xff]  ;;  %v180_v4 = vld [vmem:[#allocation5 + $0x278] sm:$0xff] }
  0x56   :  { %787 = vmatprep.subr.mxu1 %v154_v42  ;;  %754 = vmatprep.subr.mxu0 %v121_v43  ;;  %v133_v2 = vld [vmem:[#allocation5 + $0x100] sm:$0xff]  ;;  %v195_v6 = vld [vmem:[#allocation5 + $0x2f0] sm:$0xff]  ;;  %v95_v8 = vld [vmem:[#allocation2 + $0x28] sm:$0xff] }
  0x57   :  { %788 = vmatpush3.msra.mxu1 %v138_v44  ;;  %755 = vmatpush3.msra.mxu0 %v105_v45  ;;  %v92_v5 = vld [vmem:[#allocation2 + $0x10] sm:$0xff]  ;;  %v179_v7 = vld [vmem:[#allocation5 + $0x270] sm:$0xff]  ;;  %v194_v9 = vld [vmem:[#allocation5 + $0x2e8] sm:$0xff] }
  0x58   :  { %789 = vmatprep.subr.mxu1 %v153_v46  ;;  %756 = vmatprep.subr.mxu0 %v120_v47  ;;  %v178_v10 = vld [vmem:[#allocation5 + $0x268] sm:$0xff]  ;;  %v193_v11 = vld [vmem:[#allocation5 + $0x2e0] sm:$0xff]  ;;  %v192_v13 = vld [vmem:[#allocation5 + $0x2d8] sm:$0xff] }
  0x59   :  { %790 = vmatpush3.msra.mxu1 %v137_v48  ;;  %757 = vmatpush3.msra.mxu0 %v104_v49  ;;  %v177_v12 = vld [vmem:[#allocation5 + $0x260] sm:$0xff]  ;;  %v176_v14 = vld [vmem:[#allocation5 + $0x258] sm:$0xff]  ;;  %v191_v15 = vld [vmem:[#allocation5 + $0x2d0] sm:$0xff] }
  0x5a   :  { %791 = vmatprep.subr.mxu1 %v152_v50  ;;  %758 = vmatprep.subr.mxu0 %v119_v51  ;;  %v175_v16 = vld [vmem:[#allocation5 + $0x250] sm:$0xff]  ;;  %v190_v17 = vld [vmem:[#allocation5 + $0x2c8] sm:$0xff]  ;;  %v189_v19 = vld [vmem:[#allocation5 + $0x2c0] sm:$0xff] }
  0x5b   :  { %792 = vmatpush3.msra.mxu1 %v136_v52  ;;  %759 = vmatpush3.msra.mxu0 %v103_v53  ;;  %v174_v18 = vld [vmem:[#allocation5 + $0x248] sm:$0xff]  ;;  %v173_v20 = vld [vmem:[#allocation5 + $0x240] sm:$0xff]  ;;  %v188_v21 = vld [vmem:[#allocation5 + $0x2b8] sm:$0xff] }
  0x5c   :  { %793 = vmatprep.subr.mxu1 %v151_v54  ;;  %760 = vmatprep.subr.mxu0 %v118_v55  ;;  %v172_v22 = vld [vmem:[#allocation5 + $0x238] sm:$0xff]  ;;  %v187_v23 = vld [vmem:[#allocation5 + $0x2b0] sm:$0xff]  ;;  %v186_v25 = vld [vmem:[#allocation5 + $0x2a8] sm:$0xff] }
  0x5d   :  { %794 = vmatpush3.msra.mxu1 %v135_v56  ;;  %761 = vmatpush3.msra.mxu0 %v102_v57  ;;  %v171_v24 = vld [vmem:[#allocation5 + $0x230] sm:$0xff]  ;;  %v170_v26 = vld [vmem:[#allocation5 + $0x228] sm:$0xff]  ;;  %v185_v27 = vld [vmem:[#allocation5 + $0x2a0] sm:$0xff] }
  0x5e   :  { %795 = vmatprep.subr.mxu1 %v150_v58  ;;  %762 = vmatprep.subr.mxu0 %v117_v59  ;;  %v169_v28 = vld [vmem:[#allocation5 + $0x220] sm:$0xff]  ;;  %v184_v29 = vld [vmem:[#allocation5 + $0x298] sm:$0xff]  ;;  %v183_v31 = vld [vmem:[#allocation5 + $0x290] sm:$0xff] }
  0x5f   :  { %265 = vmatprep.mubr.f32.mxu0 %v91_v60  ;;  %763 = vmatpush3.msra.mxu0 %v101_v61  ;;  %v168_v30 = vld [vmem:[#allocation5 + $0x218] sm:$0xff]  ;;  %v167_v32 = vld [vmem:[#allocation5 + $0x210] sm:$0xff]  ;;  %v182_v33 = vld [vmem:[#allocation5 + $0x288] sm:$0xff] }
  0x60   :  { %796 = vmatpush3.msra.mxu1 %v134_v62  ;;  %266 = vmatmul.mubr.f32.vlgmr.msra.gmra.mxu0 %v90_v63  ;;  %v166_v34 = vld [vmem:[#allocation5 + $0x208] sm:$0xff]  ;;  %v181_v35 = vld [vmem:[#allocation5 + $0x280] sm:$0xff]  ;;  %v94_v37 = vld [vmem:[#allocation2 + $0x20] sm:$0xff] }
  0x61   :  { %797 = vmatprep.subr.mxu1 %v149_v0  ;;  %802 = vmatprep.subr.mxu0 %v196_v1  ;;  %v165_v36 = vld [vmem:[#allocation5 + $0x200] sm:$0xff]  ;;  %v443_v38 = vld [vmem:[#allocation7 + $0xf8] sm:$0xff]  ;;  %v442_v39 = vld [vmem:[#allocation7 + $0xf0] sm:$0xff] }
  0x62   :  { %798 = vmatpush3.msra.mxu1 %v133_v2  ;;  %335 = vmatprep.mubr.f32.mxu1 %v93_v3  ;;  %v441_v40 = vld [vmem:[#allocation7 + $0xe8] sm:$0xff]  ;;  %v440_v41 = vld [vmem:[#allocation7 + $0xe0] sm:$0xff]  ;;  %v439_v42 = vld [vmem:[#allocation7 + $0xd8] sm:$0xff] }
  0x63   :  { %803 = vmatpush3.msra.mxu0 %v180_v4  ;;  %336 = vmatmul.mubr.f32.vlgmr.msra.gmra.mxu1 %v92_v5  ;;  %v438_v43 = vld [vmem:[#allocation7 + $0xd0] sm:$0xff]  ;;  %v437_v44 = vld [vmem:[#allocation7 + $0xc8] sm:$0xff]  ;;  %v436_v45 = vld [vmem:[#allocation7 + $0xc0] sm:$0xff] }
  0x64   :  { %804 = vmatprep.subr.mxu0 %v195_v6  ;;  %405 = vmatprep.mubr.f32.mxu0 %v95_v8  ;;  %v435_v46 = vld [vmem:[#allocation7 + $0xb8] sm:$0xff]  ;;  %v434_v47 = vld [vmem:[#allocation7 + $0xb0] sm:$0xff]  ;;  %v433_v48 = vld [vmem:[#allocation7 + $0xa8] sm:$0xff]  ;;  %v1090_v6 = vmov 0.0  }
  0x65   :  { %805 = vmatpush3.msra.mxu0 %v179_v7  ;;  %455 = vmatprep.subr.mxu1 %v443_v38  ;;  %v432_v49 = vld [vmem:[#allocation7 + $0xa0] sm:$0xff]  ;;  %v431_v50 = vld [vmem:[#allocation7 + $0x98] sm:$0xff]  ;;  %v430_v51 = vld [vmem:[#allocation7 + $0x90] sm:$0xff] }
  0x66   :  { %806 = vmatprep.subr.mxu0 %v194_v9  ;;  %456 = vmatpush1.msra.mxu1 %v442_v39  ;;  %v429_v52 = vld [vmem:[#allocation7 + $0x88] sm:$0xff]  ;;  %v428_v53 = vld [vmem:[#allocation7 + $0x80] sm:$0xff]  ;;  %v427_v54 = vld [vmem:[#allocation7 + $0x78] sm:$0xff] }
  0x67   :  { %807 = vmatpush3.msra.mxu0 %v178_v10  ;;  %457 = vmatprep.subr.mxu1 %v441_v40  ;;  %v426_v55 = vld [vmem:[#allocation7 + $0x70] sm:$0xff]  ;;  %v425_v56 = vld [vmem:[#allocation7 + $0x68] sm:$0xff]  ;;  %v424_v57 = vld [vmem:[#allocation7 + $0x60] sm:$0xff] }
  0x68   :  { %808 = vmatprep.subr.mxu0 %v193_v11  ;;  %458 = vmatpush1.msra.mxu1 %v440_v41  ;;  %v423_v58 = vld [vmem:[#allocation7 + $0x58] sm:$0xff]  ;;  %v422_v59 = vld [vmem:[#allocation7 + $0x50] sm:$0xff]  ;;  %v421_v60 = vld [vmem:[#allocation7 + $0x48] sm:$0xff] }
  0x69   :  { %809 = vmatpush3.msra.mxu0 %v177_v12  ;;  %459 = vmatprep.subr.mxu1 %v439_v42  ;;  %v420_v61 = vld [vmem:[#allocation7 + $0x40] sm:$0xff]  ;;  %v419_v62 = vld [vmem:[#allocation7 + $0x38] sm:$0xff]  ;;  %v418_v63 = vld [vmem:[#allocation7 + $0x30] sm:$0xff] }
  0x6a   :  { %810 = vmatprep.subr.mxu0 %v192_v13  ;;  %460 = vmatpush1.msra.mxu1 %v438_v43  ;;  %v417_v0 = vld [vmem:[#allocation7 + $0x28] sm:$0xff]  ;;  %v416_v1 = vld [vmem:[#allocation7 + $0x20] sm:$0xff]  ;;  %v415_v2 = vld [vmem:[#allocation7 + $0x18] sm:$0xff] }
  0x6b   :  { %811 = vmatpush3.msra.mxu0 %v176_v14  ;;  %461 = vmatprep.subr.mxu1 %v437_v44  ;;  %v414_v3 = vld [vmem:[#allocation7 + $0x10] sm:$0xff]  ;;  %v413_v4 = vld [vmem:[#allocation7 + $0x8] sm:$0xff]  ;;  %v412_v5 = vld [vmem:[#allocation7] sm:$0xff] }
  0x6c   :  { %812 = vmatprep.subr.mxu0 %v191_v15  ;;  %462 = vmatpush1.msra.mxu1 %v436_v45  ;;  %v542_v7 = vld [vmem:[#allocation8 + $0x78] sm:$0xff]  ;;  %v541_v8 = vld [vmem:[#allocation8 + $0x70] sm:$0xff]  ;;  %v540_v9 = vld [vmem:[#allocation8 + $0x68] sm:$0xff] }
  0x6d   :  { %813 = vmatpush3.msra.mxu0 %v175_v16  ;;  %463 = vmatprep.subr.mxu1 %v435_v46  ;;  %v539_v10 = vld [vmem:[#allocation8 + $0x60] sm:$0xff]  ;;  %v538_v11 = vld [vmem:[#allocation8 + $0x58] sm:$0xff]  ;;  %v537_v12 = vld [vmem:[#allocation8 + $0x50] sm:$0xff] }
  0x6e   :  { %814 = vmatprep.subr.mxu0 %v190_v17  ;;  %464 = vmatpush1.msra.mxu1 %v434_v47  ;;  %v536_v13 = vld [vmem:[#allocation8 + $0x48] sm:$0xff]  ;;  %v535_v14 = vld [vmem:[#allocation8 + $0x40] sm:$0xff]  ;;  %v534_v15 = vld [vmem:[#allocation8 + $0x38] sm:$0xff] }
  0x6f   :  { %815 = vmatpush3.msra.mxu0 %v174_v18  ;;  %465 = vmatprep.subr.mxu1 %v433_v48  ;;  %v533_v16 = vld [vmem:[#allocation8 + $0x30] sm:$0xff]  ;;  %v532_v17 = vld [vmem:[#allocation8 + $0x28] sm:$0xff]  ;;  %v531_v18 = vld [vmem:[#allocation8 + $0x20] sm:$0xff] }
  0x70   :  { %816 = vmatprep.subr.mxu0 %v189_v19  ;;  %466 = vmatpush1.msra.mxu1 %v432_v49  ;;  %v632_v38 = vld [vmem:[#allocation10 + $0x70] sm:$0xff]  ;;  %v631_v39 = vld [vmem:[#allocation10 + $0x68] sm:$0xff]  ;;  %v630_v40 = vld [vmem:[#allocation10 + $0x60] sm:$0xff] }
  0x71   :  { %817 = vmatpush3.msra.mxu0 %v173_v20  ;;  %467 = vmatprep.subr.mxu1 %v431_v50  ;;  %v629_v41 = vld [vmem:[#allocation10 + $0x58] sm:$0xff]  ;;  %v628_v42 = vld [vmem:[#allocation10 + $0x50] sm:$0xff]  ;;  %v627_v43 = vld [vmem:[#allocation10 + $0x48] sm:$0xff]  ;;  %v445_v50 = vlaneseq }
  0x72   :  { %818 = vmatprep.subr.mxu0 %v188_v21  ;;  %468 = vmatpush1.msra.mxu1 %v430_v51  ;;  %v626_v44 = vld [vmem:[#allocation10 + $0x40] sm:$0xff]  ;;  %v625_v45 = vld [vmem:[#allocation10 + $0x38] sm:$0xff]  ;;  %v624_v46 = vld [vmem:[#allocation10 + $0x30] sm:$0xff] }
  0x73   :  { %819 = vmatpush3.msra.mxu0 %v172_v22  ;;  %469 = vmatprep.subr.mxu1 %v429_v52  ;;  %v623_v47 = vld [vmem:[#allocation10 + $0x28] sm:$0xff]  ;;  %v622_v48 = vld [vmem:[#allocation10 + $0x20] sm:$0xff]  ;;  %v621_v49 = vld [vmem:[#allocation10 + $0x18] sm:$0xff]  ;;  %v446_v51 = vshrl.u32 %v445_v50, 7 }
  0x74   :  { %820 = vmatprep.subr.mxu0 %v187_v23  ;;  %470 = vmatpush1.msra.mxu1 %v428_v53  ;;  %v729_v23 = vld [vmem:[%s1207_s5] ss:$0 sm:$0xff]  ;;  %v728_v53 = vld [vmem:[%s1207_s5 + $0x1] ss:$4 sm:$0x3] }
  0x75   :  { %821 = vmatpush3.msra.mxu0 %v171_v24  ;;  %471 = vmatprep.subr.mxu1 %v427_v54  ;;  %v451_v52 = vsub.s32 1, %v446_v51 }
  0x76   :  { %822 = vmatprep.subr.mxu0 %v186_v25  ;;  %472 = vmatpush1.msra.mxu1 %v426_v55 }
  0x77   :  { %823 = vmatpush3.msra.mxu0 %v170_v26  ;;  %473 = vmatprep.subr.mxu1 %v425_v56  ;;  %v452_v54 = vrot.slane %v728_v53, %v451_v52 }
  0x78   :  { %824 = vmatprep.subr.mxu0 %v185_v27  ;;  %474 = vmatpush1.msra.mxu1 %v424_v57 }
  0x79   :  { %825 = vmatpush3.msra.mxu0 %v169_v28  ;;  %475 = vmatprep.subr.mxu1 %v423_v58 }
  0x7a   :  { %826 = vmatprep.subr.mxu0 %v184_v29  ;;  %476 = vmatpush1.msra.mxu1 %v422_v59  ;;  %v620_v59 = vld [vmem:[#allocation10 + $0x10] sm:$0xff] }
  0x7b   :  { %827 = vmatpush3.msra.mxu0 %v168_v30  ;;  %477 = vmatprep.subr.mxu1 %v421_v60  ;;  %v619_v60 = vld [vmem:[#allocation10 + $0x8] sm:$0xff] }
  0x7c   :  { %828 = vmatprep.subr.mxu0 %v183_v31  ;;  %478 = vmatpush1.msra.mxu1 %v420_v61  ;;  %v618_v61 = vld [vmem:[#allocation10] sm:$0xff] }
  0x7d   :  { %829 = vmatpush3.msra.mxu0 %v167_v32  ;;  %479 = vmatprep.subr.mxu1 %v419_v62  ;;  %v730_v62 = vld [vmem:[%s1207_s5 + $0x2] ss:$0 sm:$0xff] }
  0x7e   :  { %830 = vmatprep.subr.mxu0 %v182_v33  ;;  %480 = vmatpush1.msra.mxu1 %v418_v63  ;;  %v530_v33 = vld [vmem:[#allocation8 + $0x18] sm:$0xff] }
  0x7f   :  { %831 = vmatpush3.msra.mxu0 %v166_v34  ;;  %481 = vmatprep.subr.mxu1 %v417_v0  ;;  %v529_v34 = vld [vmem:[#allocation8 + $0x10] sm:$0xff] }
  0x80   :  { %832 = vmatprep.subr.mxu0 %v181_v35  ;;  %482 = vmatpush1.msra.mxu1 %v416_v1  ;;  %v528_v35 = vld [vmem:[#allocation8 + $0x8] sm:$0xff] }
  0x81   :  { %833 = vmatpush3.msra.mxu0 %v165_v36  ;;  %483 = vmatprep.subr.mxu1 %v415_v2  ;;  %v527_v36 = vld [vmem:[#allocation8] sm:$0xff] }
  0x82   :  { %406 = vmatmul.mubr.f32.vlgmr.msra.gmra.mxu0 %v94_v37  ;;  %484 = vmatpush1.msra.mxu1 %v414_v3  ;;  %v633_v37 = vld [vmem:[#allocation10 + $0x78] sm:$0xff]  ;;  %v447_v3 = vsub.s32 0, %v446_v51 }
  0x83   :  { %485 = vmatprep.subr.mxu1 %v413_v4  ;;  %519 = vmatprep.mubr.f32.mxu1 %v1090_v6 }
  0x84   :  { %486 = vmatpush1.msra.mxu1 %v412_v5  ;;  %871 = vmatprep.subr.mxu0 %v1090_v6  ;;  %v448_v4 = vrot.slane %v728_v53, %v447_v3  ;;  %v731_v5 = vld [vmem:[%s1207_s5 + $0x3] ss:$0 sm:$0xff] }
  0x85   :  { %906 = vmatprep.subr.mxu1 %v1090_v6  ;;  %872 = vmatpush3.msra.mxu0 %v542_v7 }
  0x86   :  { %873 = vmatprep.subr.mxu0 %v1090_v6  ;;  %903 = vmatprep.mubr.msk.f32.mxu0 %vm1091_vm0, %v1090_v6 }
  0x87   :  { %874 = vmatpush3.msra.mxu0 %v541_v8 }
  0x88   :  { %875 = vmatprep.subr.mxu0 %v1090_v6 }
  0x89   :  { %876 = vmatpush3.msra.mxu0 %v540_v9 }
  0x8a   :  { %877 = vmatprep.subr.mxu0 %v1090_v6 }
  0x8b   :  { %878 = vmatpush3.msra.mxu0 %v539_v10 }
  0x8c   :  { %879 = vmatprep.subr.mxu0 %v1090_v6 }
  0x8d   :  { %880 = vmatpush3.msra.mxu0 %v538_v11 }
  0x8e   :  { %881 = vmatprep.subr.mxu0 %v1090_v6 }
  0x8f   :  { %882 = vmatpush3.msra.mxu0 %v537_v12 }
  0x90   :  { %883 = vmatprep.subr.mxu0 %v1090_v6 }
  0x91   :  { %884 = vmatpush3.msra.mxu0 %v536_v13 }
  0x92   :  { %885 = vmatprep.subr.mxu0 %v1090_v6 }
  0x93   :  { %886 = vmatpush3.msra.mxu0 %v535_v14 }
  0x94   :  { %887 = vmatprep.subr.mxu0 %v1090_v6 }
  0x95   :  { %888 = vmatpush3.msra.mxu0 %v534_v15 }
  0x96   :  { %889 = vmatprep.subr.mxu0 %v1090_v6 }
  0x97   :  { %890 = vmatpush3.msra.mxu0 %v533_v16 }
  0x98   :  { %891 = vmatprep.subr.mxu0 %v1090_v6 }
  0x99   :  { %892 = vmatpush3.msra.mxu0 %v532_v17 }
  0x9a   :  { %893 = vmatprep.subr.mxu0 %v1090_v6 }
  0x9b   :  { %894 = vmatpush3.msra.mxu0 %v531_v18 }
  0x9c   :  { %895 = vmatprep.subr.mxu0 %v1090_v6 }
  0x9d   :  { %896 = vmatpush3.msra.mxu0 %v530_v33 }
  0x9e   :  { %897 = vmatprep.subr.mxu0 %v1090_v6 }
  0x9f   :  { %898 = vmatpush3.msra.mxu0 %v529_v34 }
  0xa0   :  { %899 = vmatprep.subr.mxu0 %v1090_v6 }
  0xa1   :  { %900 = vmatpush3.msra.mxu0 %v528_v35 }
  0xa2   :  { %901 = vmatprep.subr.mxu0 %v1090_v6 }
  0xa3   :  { %902 = vmatpush3.msra.mxu0 %v527_v36 }
 0x120   :  { %v764_v19 = vpop.f32.mrf.mxu0 }
 0x122   :  { %v765_v20 = vpop.f32.mrf.mxu0 }
 0x123   :  { %v799_v21 = vpop.f32.mrf.mxu1  ;;  %v766_v22 = vadd.f32 %v765_v20, %v764_v19 }
 0x125   :  { %v800_v24 = vpop.f32.mrf.mxu1  ;;  %v268_v25 = vadd.f32 %v766_v22, %v729_v23 }
 0x126   :  { %v801_v26 = vadd.f32 %v800_v24, %v799_v21 }
 0x128   :  { %v338_v29 = vadd.f32 %v801_v26, %v268_v25 }
 0x142   :  { %v834_v27 = vpop.f32.mrf.mxu0 }
 0x144   :  { %v835_v28 = vpop.f32.mrf.mxu0 }
 0x145   :  { %v836_v30 = vadd.f32 %v835_v28, %v834_v27 }
 0x147   :  { %v408_v31 = vadd.f32 %v836_v30, %v338_v29 }
 0x149   :  { %v411_v32 = vmax.f32 %v408_v31, 0.0 }
 0x14b   :  { %709 = vst [vmem:[#allocation11] sm:$0xff] %v411_v32  ;;  %520 = vmatmul.mubr.f32.vlgmr.msra.gmra.mxu1 %v411_v32 }
 0x14c   :  { %938 = vmatprep.mubr.msk.f32.mxu1 %vm1091_vm0, %v1090_v6  ;;  %907 = vmatpush3.msra.mxu1 %v633_v37 }
 0x14d   :  { %908 = vmatprep.subr.mxu1 %v1090_v6 }
 0x14e   :  { %909 = vmatpush3.msra.mxu1 %v632_v38 }
 0x14f   :  { %910 = vmatprep.subr.mxu1 %v1090_v6 }
 0x150   :  { %911 = vmatpush3.msra.mxu1 %v631_v39 }
 0x151   :  { %912 = vmatprep.subr.mxu1 %v1090_v6 }
 0x152   :  { %913 = vmatpush3.msra.mxu1 %v630_v40 }
 0x153   :  { %914 = vmatprep.subr.mxu1 %v1090_v6 }
 0x154   :  { %915 = vmatpush3.msra.mxu1 %v629_v41 }
 0x155   :  { %916 = vmatprep.subr.mxu1 %v1090_v6 }
 0x156   :  { %917 = vmatpush3.msra.mxu1 %v628_v42 }
 0x157   :  { %918 = vmatprep.subr.mxu1 %v1090_v6 }
 0x158   :  { %919 = vmatpush3.msra.mxu1 %v627_v43 }
 0x159   :  { %920 = vmatprep.subr.mxu1 %v1090_v6 }
 0x15a   :  { %921 = vmatpush3.msra.mxu1 %v626_v44 }
 0x15b   :  { %922 = vmatprep.subr.mxu1 %v1090_v6 }
 0x15c   :  { %923 = vmatpush3.msra.mxu1 %v625_v45 }
 0x15d   :  { %924 = vmatprep.subr.mxu1 %v1090_v6 }
 0x15e   :  { %925 = vmatpush3.msra.mxu1 %v624_v46 }
 0x15f   :  { %926 = vmatprep.subr.mxu1 %v1090_v6 }
 0x160   :  { %927 = vmatpush3.msra.mxu1 %v623_v47 }
 0x161   :  { %928 = vmatprep.subr.mxu1 %v1090_v6 }
 0x162   :  { %929 = vmatpush3.msra.mxu1 %v622_v48 }
 0x163   :  { %930 = vmatprep.subr.mxu1 %v1090_v6 }
 0x164   :  { %931 = vmatpush3.msra.mxu1 %v621_v49 }
 0x165   :  { %932 = vmatprep.subr.mxu1 %v1090_v6 }
 0x166   :  { %933 = vmatpush3.msra.mxu1 %v620_v59 }
 0x167   :  { %934 = vmatprep.subr.mxu1 %v1090_v6 }
 0x168   :  { %935 = vmatpush3.msra.mxu1 %v619_v60 }
 0x169   :  { %936 = vmatprep.subr.mxu1 %v1090_v6 }
 0x16a   :  { %937 = vmatpush3.msra.mxu1 %v618_v61 }
 0x20b   :  { %v521_v55 = vpop.f32.mrf.mxu1 }
 0x20c   :  { %v522_v6 = vadd.f32 %v521_v55, %v448_v4 }
 0x20d   :  { %v523_v56 = vpop.f32.mrf.mxu1 }
 0x20e   :  { %v524_v57 = vadd.f32 %v523_v56, %v452_v54 }
 0x210   :  { %v526_v58 = vmax.f32 %v524_v57, 0.0 }
 0x212   :  { %904 = vmatmul.mubr.f32.vlgmr.msra.gmra.mxu0 %v526_v58 }
 0x2d2   :  { %v613_v63 = vpop.f32.mrf.mxu0 }
 0x2d3   :  { %v614_v0 = vadd.f32 %v730_v62, %v613_v63 }
 0x2d4   :  { %v905_v1 = vpop.f32.mrf.mxu0 }
 0x2d5   :  { %v617_v2 = vmax.f32 %v614_v0, 0.0 }
 0x2d7   :  { %939 = vmatmul.mubr.f32.vlgmr.msra.gmra.mxu1 %v617_v2 }
 0x397   :  { %v704_v7 = vpop.f32.mrf.mxu1 }
 0x398   :  { %v705_v8 = vadd.f32 %v731_v5, %v704_v7 }
 0x399   :  { %v940_v9 = vpop.f32.mrf.mxu1 }
 0x39a   :  { %v708_v10 = vadd.f32 %v705_v8, %v522_v6 }
 0x39c   :  { %710 = vst [vmem:[#allocation11 + $0x8] sm:$0xff] %v708_v10 }
 0x39d   :  { %1064 = shalt.err (!%p1061_p1)
}
 0x39e   :  { %720 = dma.vmem_to_hbm [thread:$0]  %s718_s30, 256, %s1208_s6, [#allocation4]  }
 0x39f   :  { %1079 = dma.done.wait [#allocation4], 256  }
 0x3a0   :  { %1080 = vsyncadd [#allocation4], 4294967040 }
 0x3a1   :  { %724 = vsyncpa [#allocation3], 1 }
 0x3a2   :  { %725 = vsyncpa [#allocation6], 1 }
 0x3a3   :  { %726 = vsyncpa [#allocation9], 1 }
 0x3a4   :  { %727 = vsyncpa [#allocation4], 1 }

</bundles_post_ra>
